<compile_context>
chip_gen: v7x
topology: tpu7x:2x2x1
jax: 0.10.0
libtpu: 0.0.40
codegen_flags: <defaults>
</compile_context>

<pallas_src>
import functools

import jax
import jax.numpy as jnp
from jax.experimental import pallas as pl
from jax.experimental.pallas import tpu as pltpu


# ------------------------------------------------------------------ kernel

def _glu_kernel(x_ref, w_ref, b_ref, o_ref):
    # x_ref: (C, TILE_HW) f32 — channels on sublanes, spatial on lanes
    # w_ref: (C_out, C_in) f32 — PyTorch nn.Linear weight, used directly
    # b_ref: (C, 1)        f32 — bias column, broadcasts along lanes
    x = x_ref[...]
    lin = jnp.dot(w_ref[...], x, preferred_element_type=jnp.float32) + b_ref[...]
    # sigmoid(x) = 1 / (1 + exp(-x)); exp goes to the EUP.  (approx=True would
    # also route the reciprocal to the EUP, but exact f32 is kept here since the
    # kernel is memory-bound anyway.)
    sig = pl.reciprocal(1.0 + jnp.exp(-x), approx=False)
    # NOTE: when the last spatial block is partial, the padded lanes hold garbage
    # on input, but the contraction is only over C (always fully valid) and the
    # padded output lanes are masked on store, so garbage cannot propagate.  Do
    # not add a spatial-axis reduction here without revisiting that.
    o_ref[...] = lin * sig


# ------------------------------------------------------------------ wrapper

def prepare_glu_params(weight, bias):
    """One-time parameter prep.

    weight: (C_out, C_in) in the PyTorch nn.Linear layout (used as-is, f32).
    bias:   (C,) -> reshaped to a (C, 1) column so it broadcasts along lanes.
    """
    w = jnp.asarray(weight, jnp.float32)                 # (C_out, C_in)
    b = jnp.asarray(bias, jnp.float32).reshape(-1, 1)    # (C, 1)
    return w, b


@functools.partial(jax.jit, static_argnames=("tile_hw",))
def glu_forward(x_nchw, weight, bias_col, *, tile_hw=2048):
    """GLU forward.  x_nchw: (B, C, H, W) f32 -> (B, C, H, W) f32."""
    B, C, H, W = x_nchw.shape
    HW = H * W

    # Free reshape (NCHW is contiguous in (B, C, H*W)); no transposes, no pad.
    x3 = x_nchw.reshape(B, C, HW)

    # Pick the spatial tile: either the full extent (legal block even if HW is
    # not a multiple of 128) or a lane-aligned multiple of 128; the last block
    # may be partial (masked stores).
    if tile_hw >= HW:
        tile_hw = HW
    else:
        tile_hw = max(128, (tile_hw // 128) * 128)
    n_spatial = pl.cdiv(HW, tile_hw)

    out = pl.pallas_call(
        _glu_kernel,
        out_shape=jax.ShapeDtypeStruct((B, C, HW), jnp.float32),
        grid=(B, n_spatial),
        in_specs=[
            # activation tile: batch dim squeezed, kernel sees (C, tile_hw)
            pl.BlockSpec((None, C, tile_hw), lambda b, s: (b, 0, s)),
            # weight and bias resident in VMEM across all grid steps
            pl.BlockSpec((C, C), lambda b, s: (0, 0)),
            pl.BlockSpec((C, 1), lambda b, s: (0, 0)),
        ],
        out_specs=pl.BlockSpec((None, C, tile_hw), lambda b, s: (b, 0, s)),
        compiler_params=pltpu.CompilerParams(
            dimension_semantics=("parallel", "parallel"),
        ),
    )(x3, weight, bias_col)

    return out.reshape(B, C, H, W)


# ------------------------------------------------------------------ reference

def glu_reference(x_nchw, weight, bias):
    # pure-JAX reference of the PyTorch module (f32 everywhere)
    lin = jnp.einsum("bchw,oc->bohw", x_nchw, weight) + bias[None, :, None, None]
    return lin * (1.0 / (1.0 + jnp.exp(-x_nchw)))


# ------------------------------------------------------------------ main

if __name__ == "__main__":
    key = jax.random.PRNGKey(0)
    k_x, k_w, k_b = jax.random.split(key, 3)

    batch, channels, height, width = 2, 32, 16, 16

    # PyTorch nn.Linear default init: U(-1/sqrt(C), 1/sqrt(C))
    bound = 1.0 / float(jnp.sqrt(jnp.float32(channels)))
    weight = jax.random.uniform(k_w, (channels, channels), jnp.float32, -bound, bound)
    bias = jax.random.uniform(k_b, (channels,), jnp.float32, -bound, bound)
    x = jax.random.normal(k_x, (batch, channels, height, width), jnp.float32)

    w_f32, b_col = prepare_glu_params(weight, bias)

    # tile_hw=128 exercises the spatial grid (grid = (2, 2)) at these demo shapes;
    # production-sized H*W should use the larger default for ~0.5-1 MiB blocks.
    out = glu_forward(x, w_f32, b_col, tile_hw=128)
    out = jax.block_until_ready(out)

    assert out.shape == (batch, channels, height, width), out.shape
    assert bool(jnp.all(jnp.isfinite(out)))

    ref = glu_reference(x, weight, bias)
    # all-f32 path -> tight tolerance
    assert bool(jnp.allclose(out, ref, rtol=1e-5, atol=1e-5)), float(
        jnp.max(jnp.abs(out - ref)))

    print("KERNEL_OK")
</pallas_src>

<mosaic_0001>
module attributes {stable_mosaic.version = 11 : i64} {
  func.func @_glu_kernel(%arg0: i32, %arg1: i32, %arg2: memref<1x32x128xf32, #tpu.memory_space<vmem>>, %arg3: memref<32x32xf32, #tpu.memory_space<vmem>>, %arg4: memref<32x1xf32, #tpu.memory_space<vmem>>, %arg5: memref<1x32x128xf32, #tpu.memory_space<vmem>>) attributes {dimension_semantics = [#tpu.dimension_semantics<parallel>, #tpu.dimension_semantics<parallel>], iteration_bounds = array<i64: 2, 2>, scalar_prefetch = 0 : i64, scratch_operands = 0 : i64, tpu.core_type = #tpu.core_type<tc>, window_params = [{transform_indices = @transform_0, window_bounds = array<i64: 1, 32, 128>}, {pipeline_mode = #tpu.pipeline_mode<synchronous>, transform_indices = @transform_1, window_bounds = array<i64: 32, 32>}, {pipeline_mode = #tpu.pipeline_mode<synchronous>, transform_indices = @transform_2, window_bounds = array<i64: 32, 1>}, {transform_indices = @transform_3, window_bounds = array<i64: 1, 32, 128>}]} {
    %c0 = arith.constant 0 : index
    %c0_0 = arith.constant 0 : index
    %c0_1 = arith.constant 0 : index
    %0 = vector.load %arg2[%c0, %c0_0, %c0_1] : memref<1x32x128xf32, #tpu.memory_space<vmem>>, vector<1x32x128xf32>
    %1 = vector.shape_cast %0 : vector<1x32x128xf32> to vector<32x128xf32>
    %c0_2 = arith.constant 0 : index
    %c0_3 = arith.constant 0 : index
    %2 = vector.load %arg3[%c0_2, %c0_3] : memref<32x32xf32, #tpu.memory_space<vmem>>, vector<32x32xf32>
    %cst = arith.constant dense<0.000000e+00> : vector<32x128xf32>
    %3 = tpu.matmul %2, %1, %cst {dimension_numbers = #tpu.dot_dimension_numbers<[1], [0], [0], [1], [0, 0, 1, 1], [], []>} : vector<32x32xf32>, vector<32x128xf32>, vector<32x128xf32> -> vector<32x128xf32>
    %c0_4 = arith.constant 0 : index
    %c0_5 = arith.constant 0 : index
    %4 = vector.load %arg4[%c0_4, %c0_5] : memref<32x1xf32, #tpu.memory_space<vmem>>, vector<32x1xf32>
    %5 = vector.broadcast %4 : vector<32x1xf32> to vector<32x128xf32>
    %6 = arith.addf %3, %5 : vector<32x128xf32>
    %cst_6 = arith.constant 0.000000e+00 : f32
    %7 = vector.broadcast %cst_6 : f32 to vector<32x128xf32>
    %8 = arith.subf %7, %1 : vector<32x128xf32>
    %9 = math.exp %8 : vector<32x128xf32>
    %cst_7 = arith.constant 1.000000e+00 : f32
    %10 = vector.broadcast %cst_7 : f32 to vector<32x128xf32>
    %11 = arith.addf %10, %9 : vector<32x128xf32>
    %12 = tpu.reciprocal %11 : vector<32x128xf32> -> vector<32x128xf32>
    %13 = arith.mulf %6, %12 : vector<32x128xf32>
    %c0_8 = arith.constant 0 : index
    %c0_9 = arith.constant 0 : index
    %c0_10 = arith.constant 0 : index
    %14 = vector.load %arg5[%c0_8, %c0_9, %c0_10] : memref<1x32x128xf32, #tpu.memory_space<vmem>>, vector<1x32x128xf32>
    %15 = vector.shape_cast %14 : vector<1x32x128xf32> to vector<32x128xf32>
    %16 = vector.shape_cast %13 : vector<32x128xf32> to vector<1x32x128xf32>
    tpu.vector_store %arg5[%c0_8, %c0_9, %c0_10], %16 {strides = array<i32>} : memref<1x32x128xf32, #tpu.memory_space<vmem>>, vector<1x32x128xf32>,
    return
  }
  func.func @transform_0(%arg0: i32, %arg1: i32) -> (i32, i32, i32) {
    %c0_i32 = arith.constant 0 : i32
    %c0_i32_0 = arith.constant 0 : i32
    return %arg0, %c0_i32, %arg1 : i32, i32, i32
  }
  func.func @transform_1(%arg0: i32, %arg1: i32) -> (i32, i32) {
    %c0_i32 = arith.constant 0 : i32
    %c0_i32_0 = arith.constant 0 : i32
    %c0_i32_1 = arith.constant 0 : i32
    return %c0_i32, %c0_i32_0 : i32, i32
  }
  func.func @transform_2(%arg0: i32, %arg1: i32) -> (i32, i32) {
    %c0_i32 = arith.constant 0 : i32
    %c0_i32_0 = arith.constant 0 : i32
    %c0_i32_1 = arith.constant 0 : i32
    return %c0_i32, %c0_i32_0 : i32, i32
  }
  func.func @transform_3(%arg0: i32, %arg1: i32) -> (i32, i32, i32) {
    %c0_i32 = arith.constant 0 : i32
    %c0_i32_0 = arith.constant 0 : i32
    return %arg0, %c0_i32, %arg1 : i32, i32, i32
  }
}

</mosaic_0001>

<bundles_post_ra>
// kernel: glu_forward.1
= control target key start
LH: loop header
LB: loop body
LE: loop exit
PB: predicated region body
PF: predicated region fallthrough
CT: control target
= control target key end

     0   :  { %s719_s12 = smov 0   ;;  %s721_s13 = smov 0   ;;  %s847_s0 = inlined_call_operand.vmem [shape: f32[2,32,256], index: 0, kind: input, shape index: {}]   ;;  %s848_s1 = inlined_call_operand.vmem [shape: f32[32,32], index: 1, kind: input, shape index: {}]   ;;  %s849_s2 = inlined_call_operand.vmem [shape: f32[32,1], index: 2, kind: input, shape index: {}]   ;;  %s850_s3 = inlined_call_operand.vmem [shape: f32[2,32,256], index: 3, kind: output, shape index: {}]  }
   0x1   :  { %s723_s14 = smov 0   ;;  %s725_s15 = smov 0  }
   0x2   :  { %s727_s16 = smov 0   ;;  %s729_s17 = smov 0  }
   0x3   :  { %s731_s18 = smov 0  }
   0x4 LB: > { %s22_s19 = sadd.s32 1, %s688_s16  ;;  %s25_s20 = sadd.s32 1, %s692_s17  ;;  %s696_s18 = sphi %s731_s18, %s13_s18   ;;  %s692_s17 = sphi %s729_s17, %s857_s17   ;;  %s688_s16 = sphi %s727_s16, %s856_s16   ;;  %s684_s15 = sphi %s725_s15, %s855_s15   ;;  %s680_s14 = sphi %s723_s14, %s854_s14   ;;  %s676_s13 = sphi %s721_s13, %s853_s13   ;;  %s672_s12 = sphi %s719_s12, %s852_s12  }
   0x5   : > { %p23_p0 = scmp.ge.s32.totalorder %s22_s19, 2  ;;  %s514_s21 = sadd.s32 4294967295, %s696_s18  }
   0x6   : > { %p41_p1 = scmp.ne.s32.totalorder %s676_s13, %s672_s12  ;;  %p42_p2 = scmp.eq.s32.totalorder %s696_s18, 0 }
   0x7   : > { %s859_s19 = smov (%p23_p0, %s22_s19), 0  ;;  %s861_s20 = smov (!%p23_p0, %s25_s20), %s692_s17 }
   0x8   : > { %p27_p3 = scmp.ge.s32.totalorder %s861_s20, 2  ;;  %p115_p4 = scmp.eq.s32.totalorder %s514_s21, 3 }
   0x9   : > { %s30_s22 = ssub.s32 %s688_s16, %s859_s19  ;;  %p43_p5 = por %p42_p2, %p41_p1 }
   0xa   : > { %s863_s20 = smov (%p27_p3, %s861_s20), 0  ;;  %p767_p6 = por %p115_p4, %p41_p1 }
   0xb   : > { %s29_s24 = ssub.s32 %s692_s17, %s863_s20  ;;  %s34_s26 = sadd.s32 1, %s676_s13 }
   0xc   : > { %s31_s25 = sor.u32 %s30_s22, %s29_s24  ;;  %p517_p8 = scmp.ge.s32.totalorder %s696_s18, 4 }
   0xd   : > { %p32_p7 = scmp.eq.s32.totalorder %s31_s25, 0 }
   0xe   : > { %143 = sbr.rel (%p517_p8) target bundleno = 29 (0x1d), region = 24 }
   0xf   : > { %s775_s27 = scalar_select %p32_p7, %s676_s13, %s34_s26  }
  0x15   : > { %146 = sbr.rel (!%p43_p5) target bundleno = 29 (0x1d), region = 28  ;;  %s148_s28 = sand.u32 (%p43_p5), 1, %s676_s13  }
  0x16   : > { %s519_s29 = sshll.u32 (%p43_p5), %s692_s17, 3  ;;  %s518_s30 = sshll.u32 (%p43_p5), %s148_s28, 5 }
  0x17   : > { %s152_s4 = sadd.s32 (%p43_p5), %s688_s16, %s519_s29  ;;  %s150_s9 = scalar_lea.vmem (%p43_p5), [#allocation2], %s518_s30 }
  0x18   : > { %s520_s5 = sshll.u32 (%p43_p5), %s152_s4, 3 }
  0x19   : > { %s154_s8 = scalar_lea.vmem (%p43_p5), %s847_s0, %s520_s5 }
  0x1a   : > { %v188_v0 = vld [vmem:[%s154_s8] sm:$0xff] (%p43_p5)  ;;  %v190_v1 = vld [vmem:[%s154_s8 + $0x10] sm:$0xff] (%p43_p5) }
  0x1b   : > { %v192_v2 = vld [vmem:[%s154_s8 + $0x20] sm:$0xff] (%p43_p5)  ;;  %189 = vst [vmem:[%s150_s9] sm:$0xff] (%p43_p5), %v188_v0  ;;  %191 = vst [vmem:[%s150_s9 + $0x8] sm:$0xff] (%p43_p5), %v190_v1  ;;  %v194_v3 = vld [vmem:[%s154_s8 + $0x30] sm:$0xff] (%p43_p5) }
  0x1c   : > { %193 = vst [vmem:[%s150_s9 + $0x10] sm:$0xff] %v192_v2  ;;  %195 = vst [vmem:[%s150_s9 + $0x18] sm:$0xff] %v194_v3 }
  0x1d PF: > { %p521_p9 = scmp.ge.s32.totalorder %s696_s18, 1  ;;  %p200_p10 = scmp.lt.s32.totalorder %s696_s18, 5 }
  0x1f   : > { %p201_p11 = pnand %p521_p9, %p200_p10 }
  0x20   : > { %s207_s10 = sand.u32 (!%p201_p11), 1, %s672_s12   ;;  %v233_v4 = vld [vmem:[%s848_s1] sm:$0xff] (!%p201_p11)  ;;  %vm261_vm0 = vcmask (!%p201_p11), 261120   ;;  %v235_v5 = vld [vmem:[%s848_s1 + $0x10] sm:$0xff] (!%p201_p11)  ;;  %v698_v8 = vmov (!%p201_p11), 0   ;;  %v240_v15 = vld [vmem:[%s849_s2 + $0x18] sm:$0xff] (!%p201_p11) }
  0x21   : > { %204 = sbr.rel (%p201_p11) target bundleno = 272 (0x110), region = 66  ;;  %s793_s25 = sshll.u32 (!%p201_p11), %s207_s10, 5  ;;  %549 = vmatprep.mubr.msk.f32.mxu0 (!%p201_p11), %vm261_vm0, %v233_v4  ;;  %552 = vmatprep.mubr.msk.f32.mxu1 (!%p201_p11), %vm261_vm0, %v235_v5  ;;  %v239_v6 = vld [vmem:[%s849_s2 + $0x10] sm:$0xff] (!%p201_p11)  ;;  %v237_v7 = vld [vmem:[%s849_s2] sm:$0xff] (!%p201_p11)  ;;  %v238_v16 = vld [vmem:[%s849_s2 + $0x8] sm:$0xff] (!%p201_p11) }
  0x22   : > { %625 = vset.pattern.permute.xlu1 (!%p201_p11), %v698_v8  ;;  %624 = vset.pattern.permute.xlu0 (!%p201_p11), %v698_v8  ;;  %s209_s30 = scalar_lea.vmem (!%p201_p11), [#allocation2], %s793_s25  ;;  %v234_v17 = vld [vmem:[%s848_s1 + $0x8] sm:$0xff] (!%p201_p11)  ;;  %v236_v18 = vld [vmem:[%s848_s1 + $0x18] sm:$0xff] (!%p201_p11)  ;;  %s228_s21 = scalar_lea.vmem (!%p201_p11), [#allocation3], %s793_s25 }
  0x23   : > { %v229_v9 = vld [vmem:[%s209_s30] sm:$0xff] (!%p201_p11)  ;;  %v230_v10 = vld [vmem:[%s209_s30 + $0x8] sm:$0xff] (!%p201_p11)  ;;  %v231_v11 = vld [vmem:[%s209_s30 + $0x10] sm:$0xff] (!%p201_p11)  ;;  %253 = vperm.xlu1 (!%p201_p11), %625, %v239_v6   ;;  %243 = vperm.xlu0 (!%p201_p11), %624, %v237_v7  }
  0x24   : > { %v555_v12 = vpack.c.bf16 (!%p201_p11), %v230_v10, %v229_v9  ;;  %v232_v13 = vld [vmem:[%s209_s30 + $0x18] sm:$0xff] (!%p201_p11)  ;;  %v360_v19 = vsub.f32 (!%p201_p11), 0.0, %v230_v10  ;;  %v359_v21 = vsub.f32 (!%p201_p11), 0.0, %v229_v9  ;;  %v361_v22 = vsub.f32 (!%p201_p11), 0.0, %v231_v11 }
  0x25   : > { %v559_v14 = vpack.c.bf16 (!%p201_p11), %v232_v13, %v231_v11  ;;  %v362_v20 = vsub.f32 (!%p201_p11), 0.0, %v232_v13 }
  0x26   : > { %556 = vmatprep.subr.bf16.mxu0 (!%p201_p11), %v555_v12  ;;  %563 = vmatprep.subr.bf16.mxu1 (!%p201_p11), %v555_v12  ;;  %v365_v23 = vmul.f32 (!%p201_p11), 1.442695, %v360_v19  ;;  %v363_v25 = vmul.f32 (!%p201_p11), 1.442695, %v359_v21  ;;  %v367_v26 = vmul.f32 (!%p201_p11), 1.442695, %v361_v22 }
  0x27   : > { %558 = vmatpush3.bf16.msra.mxu0 (!%p201_p11), %v555_v12  ;;  %565 = vmatpush3.bf16.msra.mxu1 (!%p201_p11), %v555_v12  ;;  %v369_v24 = vmul.f32 (!%p201_p11), 1.442695, %v362_v20 }
  0x28   : > { %560 = vmatprep.subr.bf16.mxu0 %v559_v14  ;;  %564 = vmatprep.subr.bf16.mxu1 %v559_v14  ;;  %626 = vpow2.f32 %v365_v23  ;;  %s529_s22 = sshll.u32 (%p767_p6), %s684_s15, 3 }
  0x29   : > { %258 = vperm.xlu1 %625, %v240_v15   ;;  %248 = vperm.xlu0 %624, %v238_v16   ;;  %628 = vpow2.f32 %v369_v24  ;;  %s395_s24 = sadd.s32 (%p767_p6), %s680_s14, %s529_s22 }
  0x2a   : > { %630 = vpow2.f32 %v363_v25  ;;  %s530_s26 = sshll.u32 (%p767_p6), %s395_s24, 3 }
  0x2b   : > { %562 = vmatpush3.bf16.msra.mxu0 %v559_v14  ;;  %566 = vmatpush3.bf16.msra.mxu1 %v559_v14  ;;  %632 = vpow2.f32 %v367_v26  ;;  %s397_s25 = scalar_lea.vmem (%p767_p6), %s850_s3, %s530_s26 }
  0x2e   : > { %550 = vmatmul.mubr.msk.f32.vlgmr.msra.gmra.mrb[0].mxu0 %vm261_vm0, %v234_v17  ;;  %553 = vmatmul.mubr.msk.f32.vlgmr.msra.gmra.mrb[0].mxu1 %vm261_vm0, %v236_v18 }
  0x32   : > { %v627_v27 = vpop.eup %626 }
  0x33   : > { %v629_v28 = vpop.eup %628  ;;  %v372_v31 = vadd.f32 1.0, %v627_v27 }
  0x34   : > { %v631_v29 = vpop.eup %630  ;;  %v374_v32 = vadd.f32 1.0, %v629_v28 }
  0x35   : > { %v633_v30 = vpop.eup %632  ;;  %v371_v33 = vadd.f32 1.0, %v631_v29  ;;  %634 = vrcp.f32 %v372_v31 }
  0x36   : > { %v373_v34 = vadd.f32 1.0, %v633_v30  ;;  %636 = vrcp.f32 %v374_v32 }
  0x37   : > { %638 = vrcp.f32 %v371_v33 }
  0x38   : > { %640 = vrcp.f32 %v373_v34 }
  0x3f   : > { %v635_v37 = vpop.eup %634 }
  0x40   : > { %v637_v38 = vpop.eup %636 }
  0x41   : > { %v639_v41 = vpop.eup %638 }
  0x42   : > { %v641_v44 = vpop.eup %640 }
  0xa2   : > { %v254_v35 = vpop.permute.xlu1 %253  ;;  %v244_v36 = vpop.permute.xlu0 %243 }
  0xa8   : > { %v259_v39 = vpop.permute.xlu1 %258  ;;  %v249_v40 = vpop.permute.xlu0 %248 }
 0x101   : > { %v551_v42 = vpop.f32.mrb[0].mxu0  ;;  %v554_v43 = vpop.f32.mrb[0].mxu1  ;;  %393 = sbr.rel (!%p767_p6) target bundleno = 272 (0x110), region = 74 }
 0x102   : > { %v346_v45 = vadd.f32 %v551_v42, %v249_v40  ;;  %v356_v46 = vadd.f32 %v554_v43, %v259_v39  ;;  %v340_v47 = vpop.f32.mrb[1].mxu0  ;;  %v350_v48 = vpop.f32.mrb[1].mxu1 }
 0x103   : > { %v341_v49 = vadd.f32 %v340_v47, %v244_v36  ;;  %v351_v50 = vadd.f32 %v350_v48, %v254_v35 }
 0x104   : > { %v380_v51 = vmul.f32 %v635_v37, %v346_v45  ;;  %v382_v52 = vmul.f32 %v637_v38, %v356_v46 }
 0x105   : > { %v379_v53 = vmul.f32 %v639_v41, %v341_v49  ;;  %v381_v54 = vmul.f32 %v641_v44, %v351_v50 }
 0x106   : > { %384 = vst [vmem:[%s228_s21 + $0x8] sm:$0xff] %v380_v51  ;;  %386 = vst [vmem:[%s228_s21 + $0x18] sm:$0xff] %v382_v52 }
 0x107   : > { %383 = vst [vmem:[%s228_s21] sm:$0xff] %v379_v53  ;;  %385 = vst [vmem:[%s228_s21 + $0x10] sm:$0xff] %v381_v54 }
 0x10d   : > { %v433_v56 = vld [vmem:[%s228_s21 + $0x8] sm:$0xff]  ;;  %v437_v58 = vld [vmem:[%s228_s21 + $0x18] sm:$0xff] }
 0x10e   : > { %v431_v55 = vld [vmem:[%s228_s21] sm:$0xff]  ;;  %v435_v57 = vld [vmem:[%s228_s21 + $0x10] sm:$0xff]  ;;  %434 = vst [vmem:[%s397_s25 + $0x10] sm:$0xff] %v433_v56  ;;  %438 = vst [vmem:[%s397_s25 + $0x30] sm:$0xff] %v437_v58 }
 0x10f   : > { %432 = vst [vmem:[%s397_s25] sm:$0xff] %v431_v55  ;;  %436 = vst [vmem:[%s397_s25 + $0x20] sm:$0xff] %v435_v57 }
 0x110 PF: > { %s13_s18 = sadd.s32 1, %s696_s18   ;;  %s852_s12 = smov %s676_s13 }
 0x111   : > { %p10_p12 = scmp.ge.s32.totalorder %s13_s18, 6   ;;  %s853_s13 = smov %s775_s27 }
 0x112   : > { %s854_s14 = smov %s688_s16  ;;  %s855_s15 = smov %s692_s17 }
 0x113   : > { %s856_s16 = smov %s859_s19  ;;  %s857_s17 = smov %s863_s20 }
 0x114   :  { %12 = sbr.rel (!%p10_p12) target bundleno = 4 (0x4), region = 143 }

</bundles_post_ra>
